<compile_context>
chip_gen: v5e
topology: v5e:2x2
jax: 0.10.0
libtpu: 0.0.40
codegen_flags: <defaults>
</compile_context>

<pallas_src>
import jax
import jax.numpy as jnp
from jax import lax
from jax.experimental import pallas as pl
from jax.experimental.pallas import tpu as pltpu

_HIDDEN = 128
_OUT = 10
_OUT_PAD = 128  # lane-dense padded logits width


def _aux_mlp_kernel(x_ref, w1_ref, b1_ref, w2_ref, b2_ref, o_ref):
    """One batch tile: ReLU(x @ w1 + b1) @ w2p + b2p.

    x_ref : (TB, D)        bf16 batch tile
    w1_ref: (D, 128)       bf16 fc1 weight (pre-transposed, resident)
    b1_ref: (1, 128)       f32 fc1 bias
    w2_ref: (128, 128)     f32 fc2 weight (pre-transposed, zero-padded 10->128 cols)
    b2_ref: (1, 128)       f32 fc2 bias (zero-padded 10->128)
    o_ref : (TB, 128)      f32 lane-dense output; columns [:10] are the logits
    """
    # bf16 x bf16 -> f32 accumulation: native MXU path, no layout transposes.
    h = jnp.dot(x_ref[...], w1_ref[...], preferred_element_type=jnp.float32)
    h = jnp.maximum(h + b1_ref[...], 0.0)                       # bias + ReLU (VPU)
    y = jnp.dot(h, w2_ref[...], preferred_element_type=jnp.float32)
    o_ref[...] = (y + b2_ref[...]).astype(o_ref.dtype)


def _round_up(x, m):
    return (x + m - 1) // m * m


def _cdiv(a, b):
    return -(-a // b)


def _vmem_cap_bytes():
    """Generation-aware VMEM budget cap (v5e/v6e: 128 MiB, v7x: 64 MiB per TC)."""
    try:
        info = pltpu.get_tpu_info()
        cap = getattr(info, "vmem_capacity_bytes", None)
        if cap:
            return int(0.75 * cap)
    except Exception:
        pass
    return 48 * 1024 * 1024  # safe on every generation


def prepare_params(w1, b1, w2, b2):
    """One-time parameter prep (hoisted out of the per-call path).

    w1: (128, D) torch layout, b1: (128,), w2: (10, 128), b2: (10,)
    Returns (w1_t bf16 (D,128), b1 f32 (1,128), w2_t f32 (128,128), b2p f32 (1,128)).
    """
    w1_t = jnp.asarray(w1, jnp.float32).T.astype(jnp.bfloat16)           # (D, 128)
    b1_2d = jnp.asarray(b1, jnp.float32).reshape(1, _HIDDEN)             # (1, 128)
    w2p = jnp.pad(jnp.asarray(w2, jnp.float32),
                  ((0, _OUT_PAD - _OUT), (0, 0)))                        # (128, 128)
    w2_t = w2p.T                                                         # (128, 128) in,out
    b2p = jnp.pad(jnp.asarray(b2, jnp.float32),
                  (0, _OUT_PAD - _OUT)).reshape(1, _OUT_PAD)             # (1, 128)
    return w1_t, b1_2d, w2_t, b2p


def auxiliary_model_forward(x_nchw, params, *, max_batch_tile=256):
    """Forward pass of AuxiliaryModel. x_nchw: (B, C, H, W). Returns (B, 10) f32."""
    w1_t, b1_2d, w2_t, b2p = params
    B = x_nchw.shape[0]
    # nn.Flatten (layout glue in plain JAX) + bf16 activations for the DMA-bound path.
    x2d = x_nchw.reshape(B, -1).astype(jnp.bfloat16)
    D = x2d.shape[1]
    assert w1_t.shape == (D, _HIDDEN)

    # Batch tile: multiple of 8 (sublane), >=128 rows when B allows (fills MXU M
    # and hits HBM streaming bandwidth), and >=2 tiles at large B so the
    # "parallel" axis shards across v7x's two TensorCores.
    TB = _round_up(min(B, max_batch_tile), 8)
    if B > 128 and _cdiv(B, TB) < 2:
        TB = max(128, _round_up(_cdiv(B, 2), 8))
    n_tiles = _cdiv(B, TB)  # partial last block handled by Pallas; no wrapper pad copy

    # VMEM budget: double-buffered x/out tiles + resident weights (2 bufs each) + slack.
    vmem_bytes = (
        2 * TB * D * 2                      # bf16 x tiles
        + 2 * D * _HIDDEN * 2               # bf16 w1 (constant-index, still 2 bufs)
        + 2 * _HIDDEN * _OUT_PAD * 4        # f32 w2
        + 4 * (_HIDDEN + _OUT_PAD) * 4      # biases
        + 2 * TB * _OUT_PAD * 4             # f32 out tiles
        + (2 << 20)                         # Mosaic internal scratch headroom
    )
    vmem_bytes = int(max(min(vmem_bytes, _vmem_cap_bytes()), 4 * 1024 * 1024))

    out_padded = pl.pallas_call(
        _aux_mlp_kernel,
        out_shape=jax.ShapeDtypeStruct((B, _OUT_PAD), jnp.float32),
        grid_spec=pltpu.PrefetchScalarGridSpec(
            num_scalar_prefetch=0,
            grid=(n_tiles,),
            in_specs=[
                pl.BlockSpec((TB, D), lambda i: (i, 0)),              # x tile per step
                pl.BlockSpec((D, _HIDDEN), lambda i: (0, 0)),         # w1 resident
                pl.BlockSpec((1, _HIDDEN), lambda i: (0, 0)),         # b1 resident
                pl.BlockSpec((_HIDDEN, _OUT_PAD), lambda i: (0, 0)),  # w2 (padded) resident
                pl.BlockSpec((1, _OUT_PAD), lambda i: (0, 0)),        # b2 (padded) resident
            ],
            out_specs=pl.BlockSpec((TB, _OUT_PAD), lambda i: (i, 0)),
        ),
        compiler_params=pltpu.CompilerParams(
            dimension_semantics=("parallel",),
            vmem_limit_bytes=vmem_bytes,
        ),
    )(x2d, w1_t, b1_2d, w2_t, b2p)

    # Drop the zero-padded logit columns (batch is already exact: out_shape is (B, .)).
    return out_padded[:, :_OUT]


if __name__ == "__main__":
    key = jax.random.PRNGKey(0)
    kx, kw1, kb1, kw2, kb2 = jax.random.split(key, 5)

    # Small shapes consistent with the module: batch=8, C=4, H=W=16 -> input_dim=1024
    B, C, H, W = 8, 4, 16, 16
    D = C * H * W

    x = jax.random.normal(kx, (B, C, H, W), dtype=jnp.float32)

    # Deterministic parameter init (torch-style uniform ranges, shapes from __init__)
    lim1 = 1.0 / jnp.sqrt(D)
    w1 = jax.random.uniform(kw1, (128, D), minval=-lim1, maxval=lim1, dtype=jnp.float32)
    b1 = jax.random.uniform(kb1, (128,), minval=-lim1, maxval=lim1, dtype=jnp.float32)
    lim2 = 1.0 / jnp.sqrt(128.0)
    w2 = jax.random.uniform(kw2, (10, 128), minval=-lim2, maxval=lim2, dtype=jnp.float32)
    b2 = jax.random.uniform(kb2, (10,), minval=-lim2, maxval=lim2, dtype=jnp.float32)

    params = prepare_params(w1, b1, w2, b2)
    out = auxiliary_model_forward(x, params)
    out = jax.block_until_ready(out)

    # Reference: f32 math over the same bf16-quantized x / fc1 weight the kernel sees.
    xq = x.reshape(B, -1).astype(jnp.bfloat16).astype(jnp.float32)
    w1q = w1.astype(jnp.bfloat16).astype(jnp.float32)
    h_ref = jnp.maximum(
        jnp.dot(xq, w1q.T, precision=lax.Precision.HIGHEST) + b1, 0.0)
    ref = jnp.dot(h_ref, w2.T, precision=lax.Precision.HIGHEST) + b2

    assert out.shape == (B, 10)
    assert jnp.allclose(out, ref, atol=1e-2, rtol=1e-2), float(
        jnp.max(jnp.abs(out - ref)))

    print("KERNEL_OK")
</pallas_src>

<mosaic_0001>
module attributes {stable_mosaic.version = 11 : i64} {
  func.func @_aux_mlp_kernel(%arg0: i32, %arg1: memref<8x1024xbf16, #tpu.memory_space<vmem>>, %arg2: memref<1024x128xbf16, #tpu.memory_space<vmem>>, %arg3: memref<1x128xf32, #tpu.memory_space<vmem>>, %arg4: memref<128x128xf32, #tpu.memory_space<vmem>>, %arg5: memref<1x128xf32, #tpu.memory_space<vmem>>, %arg6: memref<8x128xf32, #tpu.memory_space<vmem>>) attributes {dimension_semantics = [#tpu.dimension_semantics<parallel>], iteration_bounds = array<i64: 1>, scalar_prefetch = 0 : i64, scratch_operands = 0 : i64, tpu.core_type = #tpu.core_type<tc>, window_params = [{transform_indices = @transform_0, window_bounds = array<i64: 8, 1024>}, {pipeline_mode = #tpu.pipeline_mode<synchronous>, transform_indices = @transform_1, window_bounds = array<i64: 1024, 128>}, {pipeline_mode = #tpu.pipeline_mode<synchronous>, transform_indices = @transform_2, window_bounds = array<i64: 1, 128>}, {pipeline_mode = #tpu.pipeline_mode<synchronous>, transform_indices = @transform_3, window_bounds = array<i64: 128, 128>}, {pipeline_mode = #tpu.pipeline_mode<synchronous>, transform_indices = @transform_4, window_bounds = array<i64: 1, 128>}, {transform_indices = @transform_5, window_bounds = array<i64: 8, 128>}]} {
    %c0 = arith.constant 0 : index
    %c0_0 = arith.constant 0 : index
    %0 = vector.load %arg1[%c0, %c0_0] : memref<8x1024xbf16, #tpu.memory_space<vmem>>, vector<8x1024xbf16>
    %c0_1 = arith.constant 0 : index
    %c0_2 = arith.constant 0 : index
    %1 = vector.load %arg2[%c0_1, %c0_2] : memref<1024x128xbf16, #tpu.memory_space<vmem>>, vector<1024x128xbf16>
    %cst = arith.constant dense<0.000000e+00> : vector<8x128xf32>
    %2 = tpu.matmul %0, %1, %cst {dimension_numbers = #tpu.dot_dimension_numbers<[1], [0], [0], [1], [0, 0, 1, 1], [], []>} : vector<8x1024xbf16>, vector<1024x128xbf16>, vector<8x128xf32> -> vector<8x128xf32>
    %c0_3 = arith.constant 0 : index
    %c0_4 = arith.constant 0 : index
    %3 = vector.load %arg3[%c0_3, %c0_4] : memref<1x128xf32, #tpu.memory_space<vmem>>, vector<1x128xf32>
    %4 = vector.broadcast %3 : vector<1x128xf32> to vector<8x128xf32>
    %5 = arith.addf %2, %4 : vector<8x128xf32>
    %cst_5 = arith.constant 0.000000e+00 : f32
    %6 = vector.broadcast %cst_5 : f32 to vector<8x128xf32>
    %7 = arith.maximumf %5, %6 : vector<8x128xf32>
    %c0_6 = arith.constant 0 : index
    %c0_7 = arith.constant 0 : index
    %8 = vector.load %arg4[%c0_6, %c0_7] : memref<128x128xf32, #tpu.memory_space<vmem>>, vector<128x128xf32>
    %cst_8 = arith.constant dense<0.000000e+00> : vector<8x128xf32>
    %9 = tpu.matmul %7, %8, %cst_8 {dimension_numbers = #tpu.dot_dimension_numbers<[1], [0], [0], [1], [0, 0, 1, 1], [], []>} : vector<8x128xf32>, vector<128x128xf32>, vector<8x128xf32> -> vector<8x128xf32>
    %c0_9 = arith.constant 0 : index
    %c0_10 = arith.constant 0 : index
    %10 = vector.load %arg5[%c0_9, %c0_10] : memref<1x128xf32, #tpu.memory_space<vmem>>, vector<1x128xf32>
    %11 = vector.broadcast %10 : vector<1x128xf32> to vector<8x128xf32>
    %12 = arith.addf %9, %11 : vector<8x128xf32>
    %c0_11 = arith.constant 0 : index
    %c0_12 = arith.constant 0 : index
    %13 = vector.load %arg6[%c0_11, %c0_12] : memref<8x128xf32, #tpu.memory_space<vmem>>, vector<8x128xf32>
    tpu.vector_store %arg6[%c0_11, %c0_12], %12 {strides = array<i32>} : memref<8x128xf32, #tpu.memory_space<vmem>>, vector<8x128xf32>,
    return
  }
  func.func @transform_0(%arg0: i32) -> (i32, i32) {
    %c0_i32 = arith.constant 0 : i32
    %c0_i32_0 = arith.constant 0 : i32
    return %arg0, %c0_i32 : i32, i32
  }
  func.func @transform_1(%arg0: i32) -> (i32, i32) {
    %c0_i32 = arith.constant 0 : i32
    %c0_i32_0 = arith.constant 0 : i32
    %c0_i32_1 = arith.constant 0 : i32
    return %c0_i32, %c0_i32_0 : i32, i32
  }
  func.func @transform_2(%arg0: i32) -> (i32, i32) {
    %c0_i32 = arith.constant 0 : i32
    %c0_i32_0 = arith.constant 0 : i32
    %c0_i32_1 = arith.constant 0 : i32
    return %c0_i32, %c0_i32_0 : i32, i32
  }
  func.func @transform_3(%arg0: i32) -> (i32, i32) {
    %c0_i32 = arith.constant 0 : i32
    %c0_i32_0 = arith.constant 0 : i32
    %c0_i32_1 = arith.constant 0 : i32
    return %c0_i32, %c0_i32_0 : i32, i32
  }
  func.func @transform_4(%arg0: i32) -> (i32, i32) {
    %c0_i32 = arith.constant 0 : i32
    %c0_i32_0 = arith.constant 0 : i32
    %c0_i32_1 = arith.constant 0 : i32
    return %c0_i32, %c0_i32_0 : i32, i32
  }
  func.func @transform_5(%arg0: i32) -> (i32, i32) {
    %c0_i32 = arith.constant 0 : i32
    %c0_i32_0 = arith.constant 0 : i32
    return %arg0, %c0_i32 : i32, i32
  }
}

</mosaic_0001>

<bundles_post_ra>
// kernel: tpu_custom_call.1
= control target key start
LH: loop header
LB: loop body
LE: loop exit
PB: predicated region body
PF: predicated region fallthrough
CT: control target
= control target key end

     0   :  { %10 = vsyncpa [#allocation3], 0  ;;  %s1266_s0 = inlined_call_operand.hbm [shape: bf16[8,1024], index: 0, kind: input, shape index: {}]   ;;  %s1267_s1 = inlined_call_operand.hbm [shape: bf16[1024,128], index: 1, kind: input, shape index: {}]   ;;  %s1268_s2 = inlined_call_operand.vmem [shape: f32[1,128], index: 2, kind: input, shape index: {}]   ;;  %s1269_s3 = inlined_call_operand.hbm [shape: f32[128,128], index: 3, kind: input, shape index: {}]   ;;  %s1270_s4 = inlined_call_operand.vmem [shape: f32[1,128], index: 4, kind: input, shape index: {}]   ;;  %s1271_s5 = inlined_call_operand.hbm [shape: f32[8,128], index: 5, kind: output, shape index: {}]  }
   0x1   :  { %11 = vsyncpa [#allocation6], 0  ;;  %s28_s20 = sshll.u32 %s1267_s1, 4  ;;  %s29_s20 = int_to_ptr.hbm [resolvable:$true] %s28_s20 }
   0x2   :  { %12 = vsyncpa [#allocation4], 0  ;;  %s1210_s21 = smov [#allocation5]   ;;  %s18_s25 = sshll.u32 %s1266_s0, 4  ;;  %s19_s25 = int_to_ptr.hbm [resolvable:$true] %s18_s25 }
   0x3   :  { %s30_s22 = sshll.u32 %s1210_s21, 4  ;;  %s1211_s26 = smov 64   ;;  %s31_s22 = int_to_ptr.vmem [resolvable:$true] %s30_s22 }
   0x4   :  { %s1212_s27 = smov 4   ;;  %s1213_s28 = smov [#allocation2]  }
   0x5   :  { %36 = dma.hbm_to_vmem [thread:$0]  %s29_s20, 8192, %s31_s22, [#allocation6], %s1211_s26, %s1211_s26, %s1212_s27  }
   0x6   :  { %s20_s29 = sshll.u32 %s1213_s28, 4  ;;  %s43_s7 = sshll.u32 %s1269_s3, 4  ;;  %s21_s29 = int_to_ptr.vmem [resolvable:$true] %s20_s29  ;;  %s44_s7 = int_to_ptr.hbm [resolvable:$true] %s43_s7 }
   0x7   :  { %23 = dma.hbm_to_vmem [thread:$0]  %s19_s25, 512, %s21_s29, [#allocation3]  }
   0x8   :  { %s1214_s1 = smov [#allocation7]   ;;  %s1215_s9 = smov 128  }
   0x9   :  { %s45_s8 = sshll.u32 %s1214_s1, 4  ;;  %s1216_s10 = smov 8   ;;  %s46_s8 = int_to_ptr.vmem [resolvable:$true] %s45_s8 }
   0xa   :  { %51 = dma.hbm_to_vmem [thread:$0]  %s44_s7, 2048, %s46_s8, [#allocation6], %s1215_s9, %s1215_s9, %s1216_s10  }
   0xb   :  { %1204 = dma.done.wait [#allocation3], 512  }
   0xc   :  { %1205 = vsyncadd [#allocation3], 4294966784 }
   0xd   :  { %1206 = dma.done.wait [#allocation6], 10240  }
   0xe   :  { %1207 = vsyncadd [#allocation6], 4294957056  ;;  %v1041_v0 = vld [vmem:[#allocation5 + $0x38] sm:$0xff]  ;;  %v1040_v4 = vld [vmem:[#allocation5 + $0x30] sm:$0xff]  ;;  %s1217_s12 = smov [#allocation8]   ;;  %s767_s16 = sshll.u32 %s1271_s5, 4  ;;  %s768_s16 = int_to_ptr.hbm [resolvable:$true] %s767_s16 }
   0xf   :  { %v1049_v1 = vld [vmem:[#allocation5 + $0x78] sm:$0xff]  ;;  %614 = vmatpush.bf16.msra.mxu0 %v1041_v0  ;;  %v1048_v5 = vld [vmem:[#allocation5 + $0x70] sm:$0xff]  ;;  %v1039_v8 = vld [vmem:[#allocation5 + $0x28] sm:$0xff]  ;;  %s765_s13 = sshll.u32 %s1217_s12, 4  ;;  %s766_s13 = int_to_ptr.vmem [resolvable:$true] %s765_s13 }
  0x10   :  { %v1057_v2 = vld [vmem:[#allocation5 + $0xb8] sm:$0xff]  ;;  %627 = vmatpush.bf16.msra.mxu1 %v1049_v1  ;;  %v1056_v6 = vld [vmem:[#allocation5 + $0xb0] sm:$0xff]  ;;  %v1047_v9 = vld [vmem:[#allocation5 + $0x68] sm:$0xff] }
  0x11   :  { %v1065_v3 = vld [vmem:[#allocation5 + $0xf8] sm:$0xff]  ;;  %640 = vmatpush.bf16.msra.mxu2 %v1057_v2  ;;  %v1064_v7 = vld [vmem:[#allocation5 + $0xf0] sm:$0xff]  ;;  %v1055_v10 = vld [vmem:[#allocation5 + $0xa8] sm:$0xff] }
  0x12   :  { %653 = vmatpush.bf16.msra.mxu3 %v1065_v3  ;;  %v1063_v11 = vld [vmem:[#allocation5 + $0xe8] sm:$0xff]  ;;  %v1038_v12 = vld [vmem:[#allocation5 + $0x20] sm:$0xff]  ;;  %v1037_v16 = vld [vmem:[#allocation5 + $0x18] sm:$0xff] }
  0x13   :  { %615 = vmatpush.bf16.msra.mxu0 %v1040_v4  ;;  %v1046_v13 = vld [vmem:[#allocation5 + $0x60] sm:$0xff]  ;;  %v1045_v17 = vld [vmem:[#allocation5 + $0x58] sm:$0xff]  ;;  %v1036_v20 = vld [vmem:[#allocation5 + $0x10] sm:$0xff] }
  0x14   :  { %628 = vmatpush.bf16.msra.mxu1 %v1048_v5  ;;  %v1054_v14 = vld [vmem:[#allocation5 + $0xa0] sm:$0xff]  ;;  %v1053_v18 = vld [vmem:[#allocation5 + $0x98] sm:$0xff]  ;;  %v1044_v21 = vld [vmem:[#allocation5 + $0x50] sm:$0xff] }
  0x15   :  { %641 = vmatpush.bf16.msra.mxu2 %v1056_v6  ;;  %v1062_v15 = vld [vmem:[#allocation5 + $0xe0] sm:$0xff]  ;;  %v1061_v19 = vld [vmem:[#allocation5 + $0xd8] sm:$0xff]  ;;  %v1052_v22 = vld [vmem:[#allocation5 + $0x90] sm:$0xff] }
  0x16   :  { %654 = vmatpush.bf16.msra.mxu3 %v1064_v7  ;;  %v1060_v23 = vld [vmem:[#allocation5 + $0xd0] sm:$0xff]  ;;  %v1035_v24 = vld [vmem:[#allocation5 + $0x8] sm:$0xff]  ;;  %v66_v29 = vld [vmem:[#allocation2] sm:$0xff] }
  0x17   :  { %616 = vmatpush.bf16.msra.mxu0 %v1039_v8  ;;  %v1043_v25 = vld [vmem:[#allocation5 + $0x48] sm:$0xff]  ;;  %v1034_v30 = vld [vmem:[#allocation5] sm:$0xff]  ;;  %v206_v33 = vunpack.c.l.b16 %v66_v29  ;;  %v207_v37 = vunpack.c.h.b16 %v66_v29  ;;  %v1073_v38 = vld [vmem:[#allocation5 + $0x138] sm:$0xff] }
  0x18   :  { %629 = vmatpush.bf16.msra.mxu1 %v1047_v9  ;;  %v1051_v26 = vld [vmem:[#allocation5 + $0x88] sm:$0xff]  ;;  %v1042_v31 = vld [vmem:[#allocation5 + $0x40] sm:$0xff]  ;;  %v1081_v39 = vld [vmem:[#allocation5 + $0x178] sm:$0xff] }
  0x19   :  { %642 = vmatpush.bf16.msra.mxu2 %v1055_v10  ;;  %v1059_v27 = vld [vmem:[#allocation5 + $0xc8] sm:$0xff]  ;;  %v1050_v34 = vld [vmem:[#allocation5 + $0x80] sm:$0xff]  ;;  %v1089_v40 = vld [vmem:[#allocation5 + $0x1b8] sm:$0xff]  ;;  %v214_v43 = vpack.c.b16 %v206_v33, %v206_v33  ;;  %v215_v45 = vpack.c.b16 %v207_v37, %v207_v37 }
  0x1a   :  { %655 = vmatpush.bf16.msra.mxu3 %v1063_v11  ;;  %v67_v28 = vld [vmem:[#allocation2 + $0x8] sm:$0xff]  ;;  %v1058_v35 = vld [vmem:[#allocation5 + $0xc0] sm:$0xff]  ;;  %v1097_v41 = vld [vmem:[#allocation5 + $0x1f8] sm:$0xff] }
  0x1b   :  { %617 = vmatpush.bf16.msra.mxu0 %v1038_v12  ;;  %v208_v32 = vunpack.c.l.b16 %v67_v28  ;;  %v209_v36 = vunpack.c.h.b16 %v67_v28  ;;  %v1072_v46 = vld [vmem:[#allocation5 + $0x130] sm:$0xff]  ;;  %v1071_v50 = vld [vmem:[#allocation5 + $0x128] sm:$0xff]  ;;  %v1070_v54 = vld [vmem:[#allocation5 + $0x120] sm:$0xff] }
  0x1c   :  { %630 = vmatpush.bf16.msra.mxu1 %v1046_v13  ;;  %v1080_v47 = vld [vmem:[#allocation5 + $0x170] sm:$0xff]  ;;  %v1079_v51 = vld [vmem:[#allocation5 + $0x168] sm:$0xff]  ;;  %v1078_v55 = vld [vmem:[#allocation5 + $0x160] sm:$0xff] }
  0x1d   :  { %643 = vmatpush.bf16.msra.mxu2 %v1054_v14  ;;  %v216_v42 = vpack.c.b16 %v208_v32, %v208_v32  ;;  %v217_v44 = vpack.c.b16 %v209_v36, %v209_v36  ;;  %v1088_v48 = vld [vmem:[#allocation5 + $0x1b0] sm:$0xff]  ;;  %v1087_v52 = vld [vmem:[#allocation5 + $0x1a8] sm:$0xff]  ;;  %v1086_v56 = vld [vmem:[#allocation5 + $0x1a0] sm:$0xff] }
  0x1e   :  { %656 = vmatpush.bf16.msra.mxu3 %v1062_v15  ;;  %v1096_v49 = vld [vmem:[#allocation5 + $0x1f0] sm:$0xff]  ;;  %v1095_v53 = vld [vmem:[#allocation5 + $0x1e8] sm:$0xff]  ;;  %v1094_v57 = vld [vmem:[#allocation5 + $0x1e0] sm:$0xff] }
  0x1f   :  { %618 = vmatpush.bf16.msra.mxu0 %v1037_v16  ;;  %v1069_v58 = vld [vmem:[#allocation5 + $0x118] sm:$0xff]  ;;  %v1068_v62 = vld [vmem:[#allocation5 + $0x110] sm:$0xff]  ;;  %v1067_v2 = vld [vmem:[#allocation5 + $0x108] sm:$0xff] }
  0x20   :  { %631 = vmatpush.bf16.msra.mxu1 %v1045_v17  ;;  %v1077_v59 = vld [vmem:[#allocation5 + $0x158] sm:$0xff]  ;;  %v1076_v63 = vld [vmem:[#allocation5 + $0x150] sm:$0xff]  ;;  %v1075_v3 = vld [vmem:[#allocation5 + $0x148] sm:$0xff] }
  0x21   :  { %644 = vmatpush.bf16.msra.mxu2 %v1053_v18  ;;  %v1085_v60 = vld [vmem:[#allocation5 + $0x198] sm:$0xff]  ;;  %v1084_v0 = vld [vmem:[#allocation5 + $0x190] sm:$0xff]  ;;  %v1083_v5 = vld [vmem:[#allocation5 + $0x188] sm:$0xff] }
  0x22   :  { %657 = vmatpush.bf16.msra.mxu3 %v1061_v19  ;;  %v1093_v61 = vld [vmem:[#allocation5 + $0x1d8] sm:$0xff]  ;;  %v1092_v1 = vld [vmem:[#allocation5 + $0x1d0] sm:$0xff]  ;;  %v1091_v6 = vld [vmem:[#allocation5 + $0x1c8] sm:$0xff] }
  0x23   :  { %619 = vmatpush.bf16.msra.mxu0 %v1036_v20  ;;  %v68_v4 = vld [vmem:[#allocation2 + $0x10] sm:$0xff]  ;;  %v69_v7 = vld [vmem:[#allocation2 + $0x18] sm:$0xff]  ;;  %v1066_v10 = vld [vmem:[#allocation5 + $0x100] sm:$0xff] }
  0x24   :  { %632 = vmatpush.bf16.msra.mxu1 %v1044_v21  ;;  %v210_v8 = vunpack.c.l.b16 %v68_v4  ;;  %v211_v9 = vunpack.c.h.b16 %v68_v4  ;;  %v1074_v11 = vld [vmem:[#allocation5 + $0x140] sm:$0xff]  ;;  %v212_v12 = vunpack.c.l.b16 %v69_v7  ;;  %v213_v13 = vunpack.c.h.b16 %v69_v7  ;;  %v734_v20 = vld [vmem:[#allocation7 + $0x78] sm:$0xff]  ;;  %v733_v21 = vld [vmem:[#allocation7 + $0x70] sm:$0xff] }
  0x25   :  { %645 = vmatpush.bf16.msra.mxu2 %v1052_v22  ;;  %v1082_v14 = vld [vmem:[#allocation5 + $0x180] sm:$0xff]  ;;  %v732_v22 = vld [vmem:[#allocation7 + $0x68] sm:$0xff]  ;;  %v726_v28 = vld [vmem:[#allocation7 + $0x38] sm:$0xff] }
  0x26   :  { %658 = vmatpush.bf16.msra.mxu3 %v1060_v23  ;;  %v1090_v15 = vld [vmem:[#allocation5 + $0x1c0] sm:$0xff]  ;;  %v218_v16 = vpack.c.b16 %v210_v8, %v210_v8  ;;  %v219_v17 = vpack.c.b16 %v211_v9, %v211_v9  ;;  %v220_v18 = vpack.c.b16 %v212_v12, %v212_v12  ;;  %v221_v19 = vpack.c.b16 %v213_v13, %v213_v13  ;;  %v725_v29 = vld [vmem:[#allocation7 + $0x30] sm:$0xff] }
  0x27   :  { %620 = vmatpush.bf16.msra.mxu0 %v1035_v24  ;;  %v731_v23 = vld [vmem:[#allocation7 + $0x60] sm:$0xff]  ;;  %v730_v24 = vld [vmem:[#allocation7 + $0x58] sm:$0xff] }
  0x28   :  { %633 = vmatpush.bf16.msra.mxu1 %v1043_v25  ;;  %v729_v25 = vld [vmem:[#allocation7 + $0x50] sm:$0xff]  ;;  %v723_v32 = vld [vmem:[#allocation7 + $0x20] sm:$0xff] }
  0x29   :  { %646 = vmatpush.bf16.msra.mxu2 %v1051_v26  ;;  %v728_v26 = vld [vmem:[#allocation7 + $0x48] sm:$0xff] }
  0x2a   :  { %659 = vmatpush.bf16.msra.mxu3 %v1059_v27  ;;  %v727_v27 = vld [vmem:[#allocation7 + $0x40] sm:$0xff] }
  0x2b   :  { %621 = vmatpush.bf16.msra.mxu0 %v1034_v30  ;;  %v724_v30 = vld [vmem:[#allocation7 + $0x28] sm:$0xff] }
  0x2c   :  { %634 = vmatpush.bf16.msra.mxu1 %v1042_v31 }
  0x2d   :  { %647 = vmatpush.bf16.msra.mxu2 %v1050_v34  ;;  %v722_v34 = vld [vmem:[#allocation7 + $0x18] sm:$0xff] }
  0x2e   :  { %660 = vmatpush.bf16.msra.mxu3 %v1058_v35  ;;  %622 = vmatmul.bf16.vlgmr.msra.gmra.mxu0 %v214_v43  ;;  %v721_v35 = vld [vmem:[#allocation7 + $0x10] sm:$0xff] }
  0x2f   :  { %666 = vmatpush.bf16.msrb.mxu0 %v1073_v38  ;;  %635 = vmatmul.bf16.vlgmr.msra.gmra.mxu1 %v215_v45  ;;  %v720_v38 = vld [vmem:[#allocation7 + $0x8] sm:$0xff] }
  0x30   :  { %679 = vmatpush.bf16.msrb.mxu1 %v1081_v39  ;;  %648 = vmatmul.bf16.vlgmr.msra.gmra.mxu2 %v216_v42  ;;  %v1106_v42 = vld [vmem:[%s1268_s2] ss:$0 sm:$0xff] }
  0x31   :  { %692 = vmatpush.bf16.msrb.mxu2 %v1089_v40  ;;  %661 = vmatmul.bf16.vlgmr.msra.gmra.mxu3 %v217_v44 }
  0x32   :  { %705 = vmatpush.bf16.msrb.mxu3 %v1097_v41  ;;  %v719_v41 = vld [vmem:[#allocation7] sm:$0xff] }
  0x33   :  { %667 = vmatpush.bf16.msrb.mxu0 %v1072_v46 }
  0x34   :  { %680 = vmatpush.bf16.msrb.mxu1 %v1080_v47 }
  0x35   :  { %693 = vmatpush.bf16.msrb.mxu2 %v1088_v48 }
  0x36   :  { %706 = vmatpush.bf16.msrb.mxu3 %v1096_v49 }
  0x37   :  { %668 = vmatpush.bf16.msrb.mxu0 %v1071_v50 }
  0x38   :  { %681 = vmatpush.bf16.msrb.mxu1 %v1079_v51 }
  0x39   :  { %694 = vmatpush.bf16.msrb.mxu2 %v1087_v52 }
  0x3a   :  { %707 = vmatpush.bf16.msrb.mxu3 %v1095_v53 }
  0x3b   :  { %669 = vmatpush.bf16.msrb.mxu0 %v1070_v54 }
  0x3c   :  { %682 = vmatpush.bf16.msrb.mxu1 %v1078_v55 }
  0x3d   :  { %695 = vmatpush.bf16.msrb.mxu2 %v1086_v56 }
  0x3e   :  { %708 = vmatpush.bf16.msrb.mxu3 %v1094_v57 }
  0x3f   :  { %670 = vmatpush.bf16.msrb.mxu0 %v1069_v58 }
  0x40   :  { %683 = vmatpush.bf16.msrb.mxu1 %v1077_v59 }
  0x41   :  { %696 = vmatpush.bf16.msrb.mxu2 %v1085_v60 }
  0x42   :  { %709 = vmatpush.bf16.msrb.mxu3 %v1093_v61 }
  0x43   :  { %671 = vmatpush.bf16.msrb.mxu0 %v1068_v62  ;;  %v1107_v62 = vld [vmem:[%s1270_s4] ss:$0 sm:$0xff] }
  0x44   :  { %684 = vmatpush.bf16.msrb.mxu1 %v1076_v63 }
  0x45   :  { %697 = vmatpush.bf16.msrb.mxu2 %v1084_v0 }
  0x46   :  { %710 = vmatpush.bf16.msrb.mxu3 %v1092_v1 }
  0x47   :  { %672 = vmatpush.bf16.msrb.mxu0 %v1067_v2 }
  0x48   :  { %685 = vmatpush.bf16.msrb.mxu1 %v1075_v3 }
  0x49   :  { %698 = vmatpush.bf16.msrb.mxu2 %v1083_v5 }
  0x4a   :  { %711 = vmatpush.bf16.msrb.mxu3 %v1091_v6 }
  0x4b   :  { %673 = vmatpush.bf16.msrb.mxu0 %v1066_v10 }
  0x4c   :  { %686 = vmatpush.bf16.msrb.mxu1 %v1074_v11 }
  0x4d   :  { %699 = vmatpush.bf16.msrb.mxu2 %v1082_v14 }
  0x4e   :  { %712 = vmatpush.bf16.msrb.mxu3 %v1090_v15  ;;  %674 = vmatmul.bf16.vlgmr.msrb.gmra.mxu0 %v218_v16 }
  0x4f   :  { %687 = vmatmul.bf16.vlgmr.msrb.gmra.mxu1 %v219_v17  ;;  %739 = vmatpush.msra.mxu0 %v734_v20 }
  0x50   :  { %700 = vmatmul.bf16.vlgmr.msrb.gmra.mxu2 %v220_v18 }
  0x51   :  { %713 = vmatmul.bf16.vlgmr.msrb.gmra.mxu3 %v221_v19  ;;  %740 = vmatpush.msra.mxu0 %v733_v21 }
  0x53   :  { %741 = vmatpush.msra.mxu0 %v732_v22 }
  0x55   :  { %742 = vmatpush.msra.mxu0 %v731_v23 }
  0x57   :  { %743 = vmatpush.msra.mxu0 %v730_v24 }
  0x59   :  { %744 = vmatpush.msra.mxu0 %v729_v25 }
  0x5b   :  { %745 = vmatpush.msra.mxu0 %v728_v26 }
  0x5d   :  { %746 = vmatpush.msra.mxu0 %v727_v27 }
  0x5f   :  { %747 = vmatpush.msra.mxu0 %v726_v28 }
  0x61   :  { %748 = vmatpush.msra.mxu0 %v725_v29 }
  0x63   :  { %749 = vmatpush.msra.mxu0 %v724_v30 }
  0x65   :  { %750 = vmatpush.msra.mxu0 %v723_v32 }
  0x67   :  { %751 = vmatpush.msra.mxu0 %v722_v34 }
  0x69   :  { %752 = vmatpush.msra.mxu0 %v721_v35 }
  0x6b   :  { %753 = vmatpush.msra.mxu0 %v720_v38 }
  0x6d   :  { %754 = vmatpush.msra.mxu0 %v719_v41 }
  0xab   :  { %v623_v31 = vpop.f32.mrf.mxu0 }
  0xac   :  { %v636_v33 = vpop.f32.mrf.mxu1  ;;  %v624_v45 = vadd.f32 %v1106_v42, %v623_v31 }
  0xae   :  { %v637_v46 = vadd.f32 %v636_v33, %v624_v45 }
  0xb3   :  { %v649_v36 = vpop.f32.mrf.mxu2  ;;  %v625_v39 = vpop.f32.mrf.mxu0 }
  0xb4   :  { %v662_v37 = vpop.f32.mrf.mxu3  ;;  %v638_v40 = vpop.f32.mrf.mxu1  ;;  %v650_v47 = vadd.f32 %v649_v36, %v637_v46 }
  0xb6   :  { %v663_v48 = vadd.f32 %v662_v37, %v650_v47 }
  0xbb   :  { %v651_v43 = vpop.f32.mrf.mxu2 }
  0xbc   :  { %v664_v44 = vpop.f32.mrf.mxu3 }
  0xcb   :  { %v675_v49 = vpop.f32.mrf.mxu0 }
  0xcc   :  { %v688_v50 = vpop.f32.mrf.mxu1  ;;  %v676_v51 = vadd.f32 %v675_v49, %v663_v48 }
  0xce   :  { %v689_v52 = vadd.f32 %v688_v50, %v676_v51 }
  0xd3   :  { %v701_v53 = vpop.f32.mrf.mxu2  ;;  %v677_v56 = vpop.f32.mrf.mxu0 }
  0xd4   :  { %v714_v54 = vpop.f32.mrf.mxu3  ;;  %v702_v55 = vadd.f32 %v701_v53, %v689_v52  ;;  %v690_v57 = vpop.f32.mrf.mxu1 }
  0xd6   :  { %v715_v58 = vadd.f32 %v714_v54, %v702_v55 }
  0xd8   :  { %v718_v59 = vmax.f32 %v715_v58, 0.0 }
  0xda   :  { %755 = vmatmul.f32.vlgmr.msra.gmra.mxu0 %v718_v59 }
  0xdb   :  { %v703_v60 = vpop.f32.mrf.mxu2 }
  0xdc   :  { %v716_v61 = vpop.f32.mrf.mxu3 }
 0x157   :  { %v756_v63 = vpop.f32.mrf.mxu0 }
 0x158   :  { %v757_v0 = vadd.f32 %v1107_v62, %v756_v63 }
 0x15a   :  { %759 = vst [vmem:[#allocation8] sm:$0xff] %v757_v0 }
 0x15b   :  { %770 = dma.vmem_to_hbm [thread:$0]  %s766_s13, 128, %s768_s16, [#allocation4]  }
 0x15c   :  { %1208 = dma.done.wait [#allocation4], 128  }
 0x15d   :  { %1209 = vsyncadd [#allocation4], 4294967168 }
 0x15e   :  { %775 = vsyncpa [#allocation3], 1 }
 0x15f   :  { %776 = vsyncpa [#allocation6], 1 }
 0x160   :  { %777 = vsyncpa [#allocation4], 1 }

</bundles_post_ra>
